<compile_context>
chip_gen: v7x
topology: tpu7x:2x2x1
jax: 0.10.0
libtpu: 0.0.40
codegen_flags: <defaults>
</compile_context>

<pallas_src>
import functools

import jax
import jax.numpy as jnp
from jax.experimental import pallas as pl
from jax.experimental.pallas import tpu as pltpu


def sinusoidal_pos_embedding(H, W, D, dtype=jnp.float32):
    """(H, W, 4*D) sinusoidal coordinate embedding."""
    k = jnp.arange(D, dtype=jnp.float32)
    inv_freq = 1.0 / (10000.0 ** (k / D))                      # (D,)
    y = jnp.arange(H, dtype=jnp.float32)[:, None] * inv_freq   # (H, D)
    x = jnp.arange(W, dtype=jnp.float32)[:, None] * inv_freq   # (W, D)
    y_sin = jnp.broadcast_to(jnp.sin(y)[:, None, :], (H, W, D))
    y_cos = jnp.broadcast_to(jnp.cos(y)[:, None, :], (H, W, D))
    x_sin = jnp.broadcast_to(jnp.sin(x)[None, :, :], (H, W, D))
    x_cos = jnp.broadcast_to(jnp.cos(x)[None, :, :], (H, W, D))
    pe = jnp.concatenate([y_sin, y_cos, x_sin, x_cos], axis=-1)
    return pe.astype(dtype)


def _im2col_cmajor(xpad_nchw, KH, KW, Ho, Wo):
    """Padded (N, C, Hp, Wp) -> (N, KH*KW*C, Ho*Wo).

    Contraction index ordered as (kh, kw, c); lane axis is the flattened
    (Ho, Wo) pixel index.  Pure XLA (fuses with the surrounding pad).
    """
    N, C = xpad_nchw.shape[0], xpad_nchw.shape[1]
    taps = [xpad_nchw[:, :, kh:kh + Ho, kw:kw + Wo]
            for kh in range(KH) for kw in range(KW)]
    patch = jnp.stack(taps, axis=1)                      # (N, KH*KW, C, Ho, Wo)
    return patch.reshape(N, KH * KW * C, Ho * Wo)


def _conv_kernel(w_ref, p_ref, b_ref, o_ref):
    # w_ref: (Cout, K9C)      channel-major flattened weights (grid-invariant)
    # p_ref: (K9C, L)         pre-im2col'd patches for this image, lane-dense
    # b_ref: (Cout, L)        per-pixel bias (PE contribution folded in)
    # o_ref: (Cout, L)        channel-major, lane-dense output
    acc = jax.lax.dot_general(
        w_ref[...], p_ref[...],
        dimension_numbers=(((1,), (0,)), ((), ())),      # no operand transpose
        preferred_element_type=jnp.float32)
    o_ref[...] = (acc + b_ref[...]).astype(o_ref.dtype)


def _conv2d_pallas(w2d, patches, bias_map):
    """patches: (N, K9C, L), w2d: (Cout, K9C), bias_map: (Cout, L)
    -> (N, Cout, L), L = Ho*Wo (multiple of 128 -> unmasked stores)."""
    N, K9C, L = patches.shape
    Cout = w2d.shape[0]
    itemsize = jnp.dtype(patches.dtype).itemsize
    cost = pl.CostEstimate(
        flops=2 * N * L * K9C * Cout,
        transcendentals=0,
        bytes_accessed=(patches.size + w2d.size + bias_map.size
                        + N * Cout * L) * itemsize)
    return pl.pallas_call(
        _conv_kernel,
        out_shape=jax.ShapeDtypeStruct((N, Cout, L), patches.dtype),
        grid_spec=pltpu.PrefetchScalarGridSpec(
            num_scalar_prefetch=0,
            grid=(N,),
            in_specs=[
                # Tiny grid-invariant operands (double-buffered by default;
                # negligible VMEM at these sizes).
                pl.BlockSpec((Cout, K9C), lambda n: (0, 0)),
                pl.BlockSpec((None, K9C, L), lambda n: (n, 0, 0)),
                pl.BlockSpec((Cout, L), lambda n: (0, 0)),
            ],
            out_specs=pl.BlockSpec((None, Cout, L), lambda n: (n, 0, 0)),
        ),
        compiler_params=pltpu.CompilerParams(
            dimension_semantics=("parallel",)),
        cost_estimate=cost,
    )(w2d, patches, bias_map)


@functools.partial(jax.jit, static_argnames=("encoder_dimension", "padding"))
def coord_conv2d(x_nchw, weight_hwio, bias, *, encoder_dimension, padding=1):
    """CoordConv2d forward.  x_nchw: (N, C, H, W) -> (N, Cout, Ho, Wo)."""
    N, C, H, W = x_nchw.shape
    KH, KW, Cin, Cout = weight_hwio.shape
    assert Cin == C + 4 * encoder_dimension
    p = padding
    Hp, Wp = H + 2 * p, W + 2 * p
    Ho, Wo = Hp - KH + 1, Wp - KW + 1                             # stride 1

    # Channel-major 2-D weights, split into real-input and PE parts.
    # Column order (kh, kw, c) matches _im2col_cmajor's flattening.
    def flat_w(w_part):
        return jnp.transpose(w_part, (3, 0, 1, 2)).reshape(Cout, -1)
    w2d_x = flat_w(weight_hwio[:, :, :C, :])                      # (Cout, 9*C)
    w2d_pe = flat_w(weight_hwio[:, :, C:, :])                     # (Cout, 9*4D)

    # Batch-invariant part: conv of the positional embedding + bias, computed
    # once with plain XLA (einsum against PE patches) and folded into a
    # per-pixel bias map consumed by the kernel.
    pe = sinusoidal_pos_embedding(H, W, encoder_dimension, x_nchw.dtype)
    pe_chw = jnp.transpose(pe, (2, 0, 1))[None]                   # (1,4D,H,W)
    pe_pad = jnp.pad(pe_chw, ((0, 0), (0, 0), (p, p), (p, p)))
    pe_patch = _im2col_cmajor(pe_pad, KH, KW, Ho, Wo)[0]          # (9*4D,HoWo)
    bias_map = (jnp.dot(w2d_pe, pe_patch,
                        preferred_element_type=jnp.float32)
                + bias.astype(jnp.float32)[:, None]).astype(x_nchw.dtype)

    # Per-batch part: only the real C input channels are contracted.  Patches
    # are pre-formed lane-dense (K9C sublanes x Ho*Wo lanes) by XLA.
    xpad = jnp.pad(x_nchw, ((0, 0), (0, 0), (p, p), (p, p)))      # (N,C,Hp,Wp)
    patches = _im2col_cmajor(xpad, KH, KW, Ho, Wo)                # (N,9C,HoWo)
    out = _conv2d_pallas(w2d_x, patches, bias_map)                # (N,Cout,HoWo)

    # Output is already channel-major: reshape only, no final transpose.
    return out.reshape(N, Cout, Ho, Wo)


if __name__ == "__main__":
    # Module config: CoordConv2d(encoder_dimension=8, in_channels=4,
    #                            out_channels=8, kernel_size=3, padding=1)
    ENC_DIM, C_IN, C_OUT, K, PAD = 8, 4, 8, 3, 1
    N, H, W = 2, 16, 16
    CIN_TOTAL = C_IN + 4 * ENC_DIM                                # 36

    key = jax.random.PRNGKey(0)
    kx, kw, kb = jax.random.split(key, 3)
    x = jax.random.normal(kx, (N, C_IN, H, W), dtype=jnp.float32)
    weight = jax.random.normal(kw, (K, K, CIN_TOTAL, C_OUT), jnp.float32) * 0.05
    bias = jax.random.normal(kb, (C_OUT,), jnp.float32) * 0.05

    out = coord_conv2d(x, weight, bias, encoder_dimension=ENC_DIM, padding=PAD)
    out = jax.block_until_ready(out)
    assert out.shape == (N, C_OUT, H, W), out.shape

    # Pure-JAX reference of the identical forward pass.
    x_nhwc = jnp.transpose(x, (0, 2, 3, 1))
    pe = sinusoidal_pos_embedding(H, W, ENC_DIM, x.dtype)
    x_cat = jnp.concatenate(
        [x_nhwc, jnp.broadcast_to(pe[None], (N, H, W, 4 * ENC_DIM))], axis=-1)
    ref = jax.lax.conv_general_dilated(
        x_cat, weight, window_strides=(1, 1), padding=((PAD, PAD), (PAD, PAD)),
        dimension_numbers=("NHWC", "HWIO", "NHWC")) + bias
    ref = jnp.transpose(ref, (0, 3, 1, 2))

    assert jnp.allclose(out, ref, atol=1e-4, rtol=1e-4), float(
        jnp.max(jnp.abs(out - ref)))
    print("KERNEL_OK")
</pallas_src>

<mosaic_0001>
module attributes {stable_mosaic.version = 11 : i64} {
  func.func @_conv_kernel(%arg0: i32, %arg1: memref<8x36xf32, #tpu.memory_space<vmem>>, %arg2: memref<1x36x256xf32, #tpu.memory_space<vmem>>, %arg3: memref<8x256xf32, #tpu.memory_space<vmem>>, %arg4: memref<1x8x256xf32, #tpu.memory_space<vmem>>) attributes {dimension_semantics = [#tpu.dimension_semantics<parallel>], iteration_bounds = array<i64: 2>, scalar_prefetch = 0 : i64, scratch_operands = 0 : i64, tpu.core_type = #tpu.core_type<tc>, window_params = [{pipeline_mode = #tpu.pipeline_mode<synchronous>, transform_indices = @transform_0, window_bounds = array<i64: 8, 36>}, {transform_indices = @transform_1, window_bounds = array<i64: 1, 36, 256>}, {pipeline_mode = #tpu.pipeline_mode<synchronous>, transform_indices = @transform_2, window_bounds = array<i64: 8, 256>}, {transform_indices = @transform_3, window_bounds = array<i64: 1, 8, 256>}]} {
    %c0 = arith.constant 0 : index
    %c0_0 = arith.constant 0 : index
    %0 = vector.load %arg1[%c0, %c0_0] : memref<8x36xf32, #tpu.memory_space<vmem>>, vector<8x36xf32>
    %c0_1 = arith.constant 0 : index
    %c0_2 = arith.constant 0 : index
    %c0_3 = arith.constant 0 : index
    %1 = vector.load %arg2[%c0_1, %c0_2, %c0_3] : memref<1x36x256xf32, #tpu.memory_space<vmem>>, vector<1x36x256xf32>
    %2 = vector.shape_cast %1 : vector<1x36x256xf32> to vector<36x256xf32>
    %cst = arith.constant dense<0.000000e+00> : vector<8x256xf32>
    %3 = tpu.matmul %0, %2, %cst {dimension_numbers = #tpu.dot_dimension_numbers<[1], [0], [0], [1], [0, 0, 1, 1], [], []>} : vector<8x36xf32>, vector<36x256xf32>, vector<8x256xf32> -> vector<8x256xf32>
    %c0_4 = arith.constant 0 : index
    %c0_5 = arith.constant 0 : index
    %4 = vector.load %arg3[%c0_4, %c0_5] : memref<8x256xf32, #tpu.memory_space<vmem>>, vector<8x256xf32>
    %5 = arith.addf %3, %4 : vector<8x256xf32>
    %c0_6 = arith.constant 0 : index
    %c0_7 = arith.constant 0 : index
    %c0_8 = arith.constant 0 : index
    %6 = vector.load %arg4[%c0_6, %c0_7, %c0_8] : memref<1x8x256xf32, #tpu.memory_space<vmem>>, vector<1x8x256xf32>
    %7 = vector.shape_cast %6 : vector<1x8x256xf32> to vector<8x256xf32>
    %8 = vector.shape_cast %5 : vector<8x256xf32> to vector<1x8x256xf32>
    tpu.vector_store %arg4[%c0_6, %c0_7, %c0_8], %8 {strides = array<i32>} : memref<1x8x256xf32, #tpu.memory_space<vmem>>, vector<1x8x256xf32>,
    return
  }
  func.func @transform_0(%arg0: i32) -> (i32, i32) {
    %c0_i32 = arith.constant 0 : i32
    %c0_i32_0 = arith.constant 0 : i32
    %c0_i32_1 = arith.constant 0 : i32
    return %c0_i32, %c0_i32_0 : i32, i32
  }
  func.func @transform_1(%arg0: i32) -> (i32, i32, i32) {
    %c0_i32 = arith.constant 0 : i32
    %c0_i32_0 = arith.constant 0 : i32
    %c0_i32_1 = arith.constant 0 : i32
    return %arg0, %c0_i32, %c0_i32_0 : i32, i32, i32
  }
  func.func @transform_2(%arg0: i32) -> (i32, i32) {
    %c0_i32 = arith.constant 0 : i32
    %c0_i32_0 = arith.constant 0 : i32
    %c0_i32_1 = arith.constant 0 : i32
    return %c0_i32, %c0_i32_0 : i32, i32
  }
  func.func @transform_3(%arg0: i32) -> (i32, i32, i32) {
    %c0_i32 = arith.constant 0 : i32
    %c0_i32_0 = arith.constant 0 : i32
    %c0_i32_1 = arith.constant 0 : i32
    return %arg0, %c0_i32, %c0_i32_0 : i32, i32, i32
  }
}

</mosaic_0001>

<bundles_post_ra>
// kernel: coord_conv2d.1
= control target key start
LH: loop header
LB: loop body
LE: loop exit
PB: predicated region body
PF: predicated region fallthrough
CT: control target
= control target key end

     0   :  { %s384_s12 = smov 0   ;;  %s414_s0 = inlined_call_operand.vmem [shape: f32[8,36], index: 0, kind: input, shape index: {}]   ;;  %s415_s1 = inlined_call_operand.vmem [shape: f32[2,36,256], index: 1, kind: input, shape index: {}]   ;;  %s416_s2 = inlined_call_operand.vmem [shape: f32[8,256], index: 2, kind: input, shape index: {}]   ;;  %s417_s3 = inlined_call_operand.vmem [shape: f32[2,8,256], index: 3, kind: output, shape index: {}]  }
   0x1 LB: > { %s323_s13 = sadd.s32 4294967295, %s361_s12   ;;  %p327_p0 = scmp.ge.s32.totalorder %s361_s12, 1  ;;  %s361_s12 = sphi %s384_s12, %s13_s12  }
   0x2   : > { %p137_p1 = scmp.lt.s32.totalorder %s361_s12, 3 }
   0x4   : > { %p138_p2 = pnand %p327_p0, %p137_p1 }
   0x5   : > { %p161_p3 = scmp.lt.s32.totalorder (!%p138_p2), %s323_s13, 1  ;;  %v363_v0 = vmov (!%p138_p2), 0.0   ;;  %vm188_vm0 = vcmask (!%p138_p2), 1043456   ;;  %v171_v15 = vld [vmem:[%s414_s0] sm:$0xff] (!%p138_p2)  ;;  %vm184_vm1 = vcmask (!%p138_p2), 293888   ;;  %v183_v17 = vld [vmem:[%s416_s2 + $0x8] sm:$0xff] (!%p138_p2) }
   0x6   : > { %141 = sbr.rel (%p138_p2) target bundleno = 246 (0xf6), region = 32  ;;  %259 = vmatprep.mubr.f32.mxu0 (!%p138_p2), %v363_v0  ;;  %v182_v16 = vld [vmem:[%s416_s2] sm:$0xff] (!%p138_p2) }
   0xd   : > { %s419_s13 = smov (!%p161_p3, %s323_s13), 1 }
   0xe   : > { %s345_s14 = smul.u32 80, %s419_s13  ;;  %s336_s20 = sshll.u32 %s419_s13, 4 }
   0xf   : > { %s170_s27 = scalar_lea.vmem %s417_s3, %s336_s20 }
  0x10   : > { %s165_s17 = scalar_lea.vmem %s415_s1, %s345_s14 }
  0x11   : > { %v173_v1 = vld [vmem:[%s165_s17 + $0x8] sm:$0xff]  ;;  %v175_v2 = vld [vmem:[%s165_s17 + $0x18] sm:$0xff]  ;;  %v172_v3 = vld [vmem:[%s165_s17] sm:$0xff] }
  0x12   : > { %v337_v4 = vpack.c.bf16 %v175_v2, %v173_v1  ;;  %v174_v5 = vld [vmem:[%s165_s17 + $0x10] sm:$0xff]  ;;  %v177_v6 = vld [vmem:[%s165_s17 + $0x28] sm:$0xff]  ;;  %v179_v7 = vld [vmem:[%s165_s17 + $0x38] sm:$0xff] }
  0x13   : > { %v339_v8 = vpack.c.bf16 %v174_v5, %v172_v3  ;;  %v341_v9 = vpack.c.bf16 %v179_v7, %v177_v6  ;;  %v176_v10 = vld [vmem:[%s165_s17 + $0x20] sm:$0xff]  ;;  %v178_v11 = vld [vmem:[%s165_s17 + $0x30] sm:$0xff]  ;;  %v181_v13 = vld [vmem:[%s165_s17 + $0x48] sm:$0xf] }
  0x14   : > { %338 = vmatprep.subr.bf16.mxu0 %v337_v4  ;;  %v343_v12 = vpack.c.bf16 %v178_v11, %v176_v10  ;;  %v180_v14 = vld [vmem:[%s165_s17 + $0x40] sm:$0xf] }
  0x15   : > { %340 = vmatpush1.bf16.msra.mxu0 %v339_v8 }
  0x16   : > { %342 = vmatprep.subr.bf16.mxu0 %v341_v9 }
  0x19   : > { %344 = vmatpush1.bf16.msra.mxu0 %v343_v12 }
  0x1a   : > { %331 = vmatprep.subr.msk.mxu0 %vm188_vm0, %v181_v13 }
  0x1d   : > { %332 = vmatpush1.msk.msra.mxu0 %vm188_vm0, %v180_v14 }
  0x1e   : > { %333 = vmatmul.mubr.msk.f32.vlgmr.msra.gmra.mrb[0].mxu0 %vm184_vm1, %v171_v15 }
  0xf1   : > { %v261_v18 = vpop.f32.mrb[0].mxu0 }
  0xf2   : > { %v262_v19 = vadd.f32 %v261_v18, %v182_v16  ;;  %v263_v20 = vpop.f32.mrb[1].mxu0 }
  0xf3   : > { %v264_v21 = vadd.f32 %v263_v20, %v183_v17 }
  0xf4   : > { %266 = vst [vmem:[%s170_s27] sm:$0xff] %v262_v19 }
  0xf5   : > { %267 = vst [vmem:[%s170_s27 + $0x8] sm:$0xff] %v264_v21 }
  0xf6 PF: > { %s13_s12 = sadd.s32 1, %s361_s12  }
  0xf7   : > { %p10_p4 = scmp.ge.s32.totalorder %s13_s12, 4  }
  0xf9   :  { %12 = sbr.rel (!%p10_p4) target bundleno = 1 (0x1), region = 62 }

</bundles_post_ra>
